<compile_context>
chip_gen: v7x
topology: tpu7x:2x2x1
jax: 0.10.0
libtpu: 0.0.40
codegen_flags: <defaults>
</compile_context>

<pallas_src>
import functools

import jax
import jax.numpy as jnp
from jax.experimental import pallas as pl
from jax.experimental.pallas import tpu as pltpu


def _relgat_kernel(tbl_ref, rel_ref, feat_ref, out_ref, *, num_rel, num_layers):
    """tbl_ref : SMEM (R+1,) pre-exponentiated per-relation softmax numerators;
                 entry R is the masked-edge sentinel and holds exactly 0.0.
       rel_ref : VMEM (bb, N, N) int32 relation ids with the adjacency mask fused
                 in (masked edges carry the sentinel id R).
       feat_ref/out_ref : VMEM (bb, N, D)."""
    rel = rel_ref[...]                                           # (bb, N, N) int32

    # Gather exp-logits as an associative sum of scalar-weighted compares.
    # Terms are independent (ILP across the 4 VALU slots); table scalars come
    # from SMEM (sreg operands).  Sentinel id == num_rel contributes 0 -> skipped.
    e = (rel == 0).astype(jnp.float32) * tbl_ref[0]
    for r in range(1, num_rel):
        e = e + (rel == r).astype(jnp.float32) * tbl_ref[r]

    # Softmax over all N*N edges of each batch element.  The table was already
    # shifted by its static max and exponentiated in the wrapper; masked edges
    # are exactly 0, so only the normalization remains.
    s = jnp.sum(jnp.sum(e, axis=2, keepdims=True), axis=1, keepdims=True)  # (bb,1,1)
    # TODO(synk): a batch row whose edges are ALL masked gives s == 0 here (the
    # reference would produce a uniform 1/(N*N) attention in that degenerate case).
    att = e * (1.0 / s)                                          # (bb, N, N)

    # Graph propagation: feature <- att @ feature, repeated num_layers times
    # (att is layer-invariant and eval-mode dropout is identity).
    # NOTE: kept in f32 to stay bit-faithful to the reference; at real model sizes
    # a bf16 cast of att/feat (f32 accumulation) halves the feature DMA.
    feat = feat_ref[...].astype(jnp.float32)                     # (bb, N, D)
    for _ in range(num_layers):
        feat = jnp.einsum("bij,bjd->bid", att, feat,
                          preferred_element_type=jnp.float32)
    out_ref[...] = feat.astype(out_ref.dtype)


def _tpu_num_tensorcores():
    """Best-effort TensorCore count per chip (v5e/v6e = 1, v4/v5p/v7x = 2)."""
    try:
        kind = jax.devices()[0].device_kind.lower()
    except Exception:
        return 1
    if "lite" in kind or "v5e" in kind or "v6e" in kind:
        return 1
    return 2


def _pick_batch_block(B, N, D, num_tc, vmem_budget_bytes=16 << 20):
    # Double-buffered rel (int32) + feat + out blocks, plus f32 working copies.
    per_b = 2 * (N * N * 4 + 2 * N * D * 4) + 4 * N * N * 4 + 2 * N * D * 4
    cap = max(1, vmem_budget_bytes // max(per_b, 1))
    if num_tc <= 1:
        # Grid steps are a serial loop on one TC: fewest, fattest steps (G=1 if it fits).
        return max(1, min(B, cap))
    # Two TensorCores: keep >= 2 grid steps so "parallel" can shard them.
    return max(1, min(cap, -(-B // 2)))


def relgat_forward(adj, rel_adj, feature, params, *, num_layers=2, batch_block=None):
    """adj: (B,N,N) 0/1 mask; rel_adj: (B,N,N) int ids; feature: (B,N,D)."""
    B, N, _ = adj.shape
    D = feature.shape[-1]
    embed = params["embed"].astype(jnp.float32)             # (R, E)
    W1 = params["W1"].astype(jnp.float32)                   # (E, H)
    b1 = params["b1"].astype(jnp.float32)                   # (H,)
    w2 = params["w2"].astype(jnp.float32)                   # (H, 1)
    b2 = jnp.asarray(params["b2"], jnp.float32)              # ()
    R = embed.shape[0]

    # ---- grid-invariant relation MLP, hoisted out of the kernel (plain JAX) ----
    # The edge logit depends only on the relation id: run the MLP once on the
    # (R, E) table instead of every grid step on (N*N, E) padding-heavy MXU tiles.
    h = jnp.maximum(embed @ W1 + b1[None, :], 0.0)            # (R, H)
    logit_tbl = (h @ w2).reshape(-1) + b2                     # (R,)
    # Pre-exponentiate with a static max (cancels in the softmax normalization);
    # append a sentinel entry (id == R) that holds exactly 0 for masked edges.
    exp_tbl = jnp.exp(logit_tbl - jnp.max(logit_tbl))
    exp_tbl = jnp.concatenate([exp_tbl, jnp.zeros((1,), jnp.float32)])   # (R+1,)

    # ---- fuse the adjacency mask into the relation-id stream -------------------
    # One int32 per edge replaces (ids + f32 mask): halves the per-edge DMA and
    # removes a VPU compare/select pass in the kernel.  Assumes adj in {0, 1}.
    # (Relation ids >= R would also fall into the sentinel-free range; the
    #  reference would index the embedding out of bounds there.)
    rel_ids = jnp.where(adj > 0, rel_adj.astype(jnp.int32), jnp.int32(R))

    # ---- generation-aware batch blocking ---------------------------------------
    if batch_block is None:
        batch_block = _pick_batch_block(B, N, D, _tpu_num_tensorcores())
    bb = max(1, min(batch_block, B))
    G = -(-B // bb)                      # cdiv
    B_pad = G * bb

    feat = feature
    if B_pad != B:
        pad = B_pad - B
        # Padded rows use relation 0 / unmasked so the softmax stays finite;
        # their outputs are sliced off below.
        rel_ids = jnp.concatenate([rel_ids, jnp.zeros((pad, N, N), jnp.int32)], 0)
        feat = jnp.concatenate([feat, jnp.zeros((pad, N, D), feature.dtype)], 0)

    rel_g = rel_ids.reshape(G, bb, N, N)
    feat_g = feat.reshape(G, bb, N, D)

    kernel = functools.partial(_relgat_kernel, num_rel=R, num_layers=num_layers)

    out = pl.pallas_call(
        kernel,
        out_shape=jax.ShapeDtypeStruct((G, bb, N, D), feature.dtype),
        grid_spec=pltpu.PrefetchScalarGridSpec(
            num_scalar_prefetch=0,
            grid=(G,),
            in_specs=[
                pl.BlockSpec(memory_space=pltpu.MemorySpace.SMEM),        # exp table (R+1,)
                pl.BlockSpec((None, bb, N, N), lambda g: (g, 0, 0, 0)),   # fused rel ids
                pl.BlockSpec((None, bb, N, D), lambda g: (g, 0, 0, 0)),   # feature
            ],
            out_specs=pl.BlockSpec((None, bb, N, D), lambda g: (g, 0, 0, 0)),
        ),
        compiler_params=pltpu.CompilerParams(
            dimension_semantics=("parallel",)),
    )(exp_tbl, rel_g, feat_g)

    return out.reshape(B_pad, N, D)[:B]


def relgat_reference(adj, rel_adj, feature, params, *, num_layers=2):
    """Pure-JAX reference mirroring the PyTorch forward (eval mode)."""
    B, N, _ = adj.shape
    relv = params["embed"][rel_adj.reshape(B, -1)]                  # (B, NN, E)
    feat = feature
    for _ in range(num_layers):
        h = jnp.maximum(relv @ params["W1"] + params["b1"], 0.0)
        logits = (h @ params["w2"]).squeeze(-1) + params["b2"]      # (B, NN)
        dmask = adj.reshape(B, -1)
        masked = logits * dmask + (1.0 - dmask) * (-1e30)
        att = jax.nn.softmax(masked, axis=1).reshape(B, N, N)
        feat = att @ feat
    return feat


def init_params(key, dep_rel_num, embed_dim, hidden_size):
    k_e, k_w1, k_b1, k_w2, k_b2 = jax.random.split(key, 5)
    lim_e = (6.0 / (dep_rel_num + embed_dim)) ** 0.5
    lim_1 = (1.0 / embed_dim) ** 0.5
    lim_2 = (1.0 / hidden_size) ** 0.5
    return {
        "embed": jax.random.uniform(k_e, (dep_rel_num, embed_dim),
                                    jnp.float32, -lim_e, lim_e),
        "W1": jax.random.uniform(k_w1, (embed_dim, hidden_size),
                                 jnp.float32, -lim_1, lim_1),
        "b1": jax.random.uniform(k_b1, (hidden_size,), jnp.float32, -lim_1, lim_1),
        "w2": jax.random.uniform(k_w2, (hidden_size, 1), jnp.float32, -lim_2, lim_2),
        "b2": jax.random.uniform(k_b2, (), jnp.float32, -lim_2, lim_2),
    }


if __name__ == "__main__":
    B, N, D = 2, 8, 32          # batch, nodes, feature dim
    E, H = 32, 64               # dep_relation_embed_dim, hidden_size
    R = 10                      # dep_rel_num
    NUM_LAYERS = 2

    key = jax.random.PRNGKey(0)
    k_p, k_adj, k_rel, k_feat = jax.random.split(key, 4)
    params = init_params(k_p, R, E, H)

    adj = (jax.random.uniform(k_adj, (B, N, N)) > 0.5).astype(jnp.float32)
    rel_adj = jax.random.randint(k_rel, (B, N, N), 0, R, dtype=jnp.int32)
    feature = jax.random.normal(k_feat, (B, N, D), dtype=jnp.float32)

    out = relgat_forward(adj, rel_adj, feature, params, num_layers=NUM_LAYERS)
    out = jax.block_until_ready(out)

    ref = relgat_reference(adj, rel_adj, feature, params, num_layers=NUM_LAYERS)
    assert out.shape == (B, N, D)
    assert jnp.allclose(out, ref, atol=1e-4, rtol=1e-4), "mismatch vs reference"

    print("KERNEL_OK")
</pallas_src>

<mosaic_0001>
module attributes {stable_mosaic.version = 11 : i64} {
  func.func @_relgat_kernel(%arg0: i32, %arg1: memref<11xf32, #tpu.memory_space<smem>>, %arg2: memref<1x1x8x8xi32, #tpu.memory_space<vmem>>, %arg3: memref<1x1x8x32xf32, #tpu.memory_space<vmem>>, %arg4: memref<1x1x8x32xf32, #tpu.memory_space<vmem>>) attributes {dimension_semantics = [#tpu.dimension_semantics<parallel>], iteration_bounds = array<i64: 2>, scalar_prefetch = 0 : i64, scratch_operands = 0 : i64, tpu.core_type = #tpu.core_type<tc>, window_params = [{transform_indices = @transform_0, window_bounds = array<i64: 11>}, {transform_indices = @transform_1, window_bounds = array<i64: 1, 1, 8, 8>}, {transform_indices = @transform_2, window_bounds = array<i64: 1, 1, 8, 32>}, {transform_indices = @transform_3, window_bounds = array<i64: 1, 1, 8, 32>}]} {
    %c0 = arith.constant 0 : index
    %c0_0 = arith.constant 0 : index
    %c0_1 = arith.constant 0 : index
    %c0_2 = arith.constant 0 : index
    %0 = vector.load %arg2[%c0, %c0_0, %c0_1, %c0_2] : memref<1x1x8x8xi32, #tpu.memory_space<vmem>>, vector<1x1x8x8xi32>
    %1 = vector.shape_cast %0 : vector<1x1x8x8xi32> to vector<1x8x8xi32>
    %c0_i32 = arith.constant 0 : i32
    %2 = vector.broadcast %c0_i32 : i32 to vector<1x8x8xi32>
    %3 = arith.cmpi eq, %1, %2 : vector<1x8x8xi32>
    %4 = arith.extui %3 : vector<1x8x8xi1> to vector<1x8x8xi32>
    %5 = arith.sitofp %4 : vector<1x8x8xi32> to vector<1x8x8xf32>
    %c0_3 = arith.constant 0 : index
    %6 = memref.load %arg1[%c0_3] : memref<11xf32, #tpu.memory_space<smem>>
    %7 = vector.broadcast %6 : f32 to vector<1x8x8xf32>
    %8 = arith.mulf %5, %7 : vector<1x8x8xf32>
    %c1_i32 = arith.constant 1 : i32
    %9 = vector.broadcast %c1_i32 : i32 to vector<1x8x8xi32>
    %10 = arith.cmpi eq, %1, %9 : vector<1x8x8xi32>
    %11 = arith.extui %10 : vector<1x8x8xi1> to vector<1x8x8xi32>
    %12 = arith.sitofp %11 : vector<1x8x8xi32> to vector<1x8x8xf32>
    %c1 = arith.constant 1 : index
    %13 = memref.load %arg1[%c1] : memref<11xf32, #tpu.memory_space<smem>>
    %14 = vector.broadcast %13 : f32 to vector<1x8x8xf32>
    %15 = arith.mulf %12, %14 : vector<1x8x8xf32>
    %16 = arith.addf %8, %15 : vector<1x8x8xf32>
    %c2_i32 = arith.constant 2 : i32
    %17 = vector.broadcast %c2_i32 : i32 to vector<1x8x8xi32>
    %18 = arith.cmpi eq, %1, %17 : vector<1x8x8xi32>
    %19 = arith.extui %18 : vector<1x8x8xi1> to vector<1x8x8xi32>
    %20 = arith.sitofp %19 : vector<1x8x8xi32> to vector<1x8x8xf32>
    %c2 = arith.constant 2 : index
    %21 = memref.load %arg1[%c2] : memref<11xf32, #tpu.memory_space<smem>>
    %22 = vector.broadcast %21 : f32 to vector<1x8x8xf32>
    %23 = arith.mulf %20, %22 : vector<1x8x8xf32>
    %24 = arith.addf %16, %23 : vector<1x8x8xf32>
    %c3_i32 = arith.constant 3 : i32
    %25 = vector.broadcast %c3_i32 : i32 to vector<1x8x8xi32>
    %26 = arith.cmpi eq, %1, %25 : vector<1x8x8xi32>
    %27 = arith.extui %26 : vector<1x8x8xi1> to vector<1x8x8xi32>
    %28 = arith.sitofp %27 : vector<1x8x8xi32> to vector<1x8x8xf32>
    %c3 = arith.constant 3 : index
    %29 = memref.load %arg1[%c3] : memref<11xf32, #tpu.memory_space<smem>>
    %30 = vector.broadcast %29 : f32 to vector<1x8x8xf32>
    %31 = arith.mulf %28, %30 : vector<1x8x8xf32>
    %32 = arith.addf %24, %31 : vector<1x8x8xf32>
    %c4_i32 = arith.constant 4 : i32
    %33 = vector.broadcast %c4_i32 : i32 to vector<1x8x8xi32>
    %34 = arith.cmpi eq, %1, %33 : vector<1x8x8xi32>
    %35 = arith.extui %34 : vector<1x8x8xi1> to vector<1x8x8xi32>
    %36 = arith.sitofp %35 : vector<1x8x8xi32> to vector<1x8x8xf32>
    %c4 = arith.constant 4 : index
    %37 = memref.load %arg1[%c4] : memref<11xf32, #tpu.memory_space<smem>>
    %38 = vector.broadcast %37 : f32 to vector<1x8x8xf32>
    %39 = arith.mulf %36, %38 : vector<1x8x8xf32>
    %40 = arith.addf %32, %39 : vector<1x8x8xf32>
    %c5_i32 = arith.constant 5 : i32
    %41 = vector.broadcast %c5_i32 : i32 to vector<1x8x8xi32>
    %42 = arith.cmpi eq, %1, %41 : vector<1x8x8xi32>
    %43 = arith.extui %42 : vector<1x8x8xi1> to vector<1x8x8xi32>
    %44 = arith.sitofp %43 : vector<1x8x8xi32> to vector<1x8x8xf32>
    %c5 = arith.constant 5 : index
    %45 = memref.load %arg1[%c5] : memref<11xf32, #tpu.memory_space<smem>>
    %46 = vector.broadcast %45 : f32 to vector<1x8x8xf32>
    %47 = arith.mulf %44, %46 : vector<1x8x8xf32>
    %48 = arith.addf %40, %47 : vector<1x8x8xf32>
    %c6_i32 = arith.constant 6 : i32
    %49 = vector.broadcast %c6_i32 : i32 to vector<1x8x8xi32>
    %50 = arith.cmpi eq, %1, %49 : vector<1x8x8xi32>
    %51 = arith.extui %50 : vector<1x8x8xi1> to vector<1x8x8xi32>
    %52 = arith.sitofp %51 : vector<1x8x8xi32> to vector<1x8x8xf32>
    %c6 = arith.constant 6 : index
    %53 = memref.load %arg1[%c6] : memref<11xf32, #tpu.memory_space<smem>>
    %54 = vector.broadcast %53 : f32 to vector<1x8x8xf32>
    %55 = arith.mulf %52, %54 : vector<1x8x8xf32>
    %56 = arith.addf %48, %55 : vector<1x8x8xf32>
    %c7_i32 = arith.constant 7 : i32
    %57 = vector.broadcast %c7_i32 : i32 to vector<1x8x8xi32>
    %58 = arith.cmpi eq, %1, %57 : vector<1x8x8xi32>
    %59 = arith.extui %58 : vector<1x8x8xi1> to vector<1x8x8xi32>
    %60 = arith.sitofp %59 : vector<1x8x8xi32> to vector<1x8x8xf32>
    %c7 = arith.constant 7 : index
    %61 = memref.load %arg1[%c7] : memref<11xf32, #tpu.memory_space<smem>>
    %62 = vector.broadcast %61 : f32 to vector<1x8x8xf32>
    %63 = arith.mulf %60, %62 : vector<1x8x8xf32>
    %64 = arith.addf %56, %63 : vector<1x8x8xf32>
    %c8_i32 = arith.constant 8 : i32
    %65 = vector.broadcast %c8_i32 : i32 to vector<1x8x8xi32>
    %66 = arith.cmpi eq, %1, %65 : vector<1x8x8xi32>
    %67 = arith.extui %66 : vector<1x8x8xi1> to vector<1x8x8xi32>
    %68 = arith.sitofp %67 : vector<1x8x8xi32> to vector<1x8x8xf32>
    %c8 = arith.constant 8 : index
    %69 = memref.load %arg1[%c8] : memref<11xf32, #tpu.memory_space<smem>>
    %70 = vector.broadcast %69 : f32 to vector<1x8x8xf32>
    %71 = arith.mulf %68, %70 : vector<1x8x8xf32>
    %72 = arith.addf %64, %71 : vector<1x8x8xf32>
    %c9_i32 = arith.constant 9 : i32
    %73 = vector.broadcast %c9_i32 : i32 to vector<1x8x8xi32>
    %74 = arith.cmpi eq, %1, %73 : vector<1x8x8xi32>
    %75 = arith.extui %74 : vector<1x8x8xi1> to vector<1x8x8xi32>
    %76 = arith.sitofp %75 : vector<1x8x8xi32> to vector<1x8x8xf32>
    %c9 = arith.constant 9 : index
    %77 = memref.load %arg1[%c9] : memref<11xf32, #tpu.memory_space<smem>>
    %78 = vector.broadcast %77 : f32 to vector<1x8x8xf32>
    %79 = arith.mulf %76, %78 : vector<1x8x8xf32>
    %80 = arith.addf %72, %79 : vector<1x8x8xf32>
    %cst = arith.constant dense<0.000000e+00> : vector<1x8xf32>
    %81 = vector.multi_reduction <add>, %80, %cst [2] : vector<1x8x8xf32> to vector<1x8xf32>
    %82 = vector.shape_cast %81 : vector<1x8xf32> to vector<1x8x1xf32>
    %cst_4 = arith.constant dense<0.000000e+00> : vector<1x1xf32>
    %83 = vector.multi_reduction <add>, %82, %cst_4 [1] : vector<1x8x1xf32> to vector<1x1xf32>
    %84 = vector.shape_cast %83 : vector<1x1xf32> to vector<1x1x1xf32>
    %cst_5 = arith.constant 1.000000e+00 : f32
    %85 = vector.broadcast %cst_5 : f32 to vector<1x1x1xf32>
    %86 = arith.divf %85, %84 : vector<1x1x1xf32>
    %87 = vector.broadcast %86 : vector<1x1x1xf32> to vector<1x8x8xf32>
    %88 = arith.mulf %80, %87 : vector<1x8x8xf32>
    %c0_6 = arith.constant 0 : index
    %c0_7 = arith.constant 0 : index
    %c0_8 = arith.constant 0 : index
    %c0_9 = arith.constant 0 : index
    %89 = vector.load %arg3[%c0_6, %c0_7, %c0_8, %c0_9] : memref<1x1x8x32xf32, #tpu.memory_space<vmem>>, vector<1x1x8x32xf32>
    %90 = vector.shape_cast %89 : vector<1x1x8x32xf32> to vector<1x8x32xf32>
    "tpu.trace_start"() <{level = 10 : i32, message = "bij,bjd->bid"}> : () -> ()
    %cst_10 = arith.constant dense<0.000000e+00> : vector<1x8x32xf32>
    %91 = tpu.matmul %88, %90, %cst_10 {dimension_numbers = #tpu.dot_dimension_numbers<[2], [1], [1], [2], [0, 0, 0, 1, 1, 2], [0], [0]>} : vector<1x8x8xf32>, vector<1x8x32xf32>, vector<1x8x32xf32> -> vector<1x8x32xf32>
    %cst_11 = arith.constant dense<0.000000e+00> : vector<1x8x32xf32>
    %92 = tpu.matmul %88, %91, %cst_11 {dimension_numbers = #tpu.dot_dimension_numbers<[2], [1], [1], [2], [0, 0, 0, 1, 1, 2], [0], [0]>} : vector<1x8x8xf32>, vector<1x8x32xf32>, vector<1x8x32xf32> -> vector<1x8x32xf32>
    "tpu.trace_stop"() : () -> ()
    %c0_12 = arith.constant 0 : index
    %c0_13 = arith.constant 0 : index
    %c0_14 = arith.constant 0 : index
    %c0_15 = arith.constant 0 : index
    %93 = vector.load %arg4[%c0_12, %c0_13, %c0_14, %c0_15] : memref<1x1x8x32xf32, #tpu.memory_space<vmem>>, vector<1x1x8x32xf32>
    %94 = vector.shape_cast %93 : vector<1x1x8x32xf32> to vector<1x8x32xf32>
    %95 = vector.shape_cast %92 : vector<1x8x32xf32> to vector<1x1x8x32xf32>
    tpu.vector_store %arg4[%c0_12, %c0_13, %c0_14, %c0_15], %95 {strides = array<i32>} : memref<1x1x8x32xf32, #tpu.memory_space<vmem>>, vector<1x1x8x32xf32>,
    return
  }
  func.func @transform_0(%arg0: i32) -> i32 {
    %c0_i32 = arith.constant 0 : i32
    %c0_i32_0 = arith.constant 0 : i32
    return %c0_i32 : i32
  }
  func.func @transform_1(%arg0: i32) -> (i32, i32, i32, i32) {
    %c0_i32 = arith.constant 0 : i32
    %c0_i32_0 = arith.constant 0 : i32
    %c0_i32_1 = arith.constant 0 : i32
    %c0_i32_2 = arith.constant 0 : i32
    return %arg0, %c0_i32, %c0_i32_0, %c0_i32_1 : i32, i32, i32, i32
  }
  func.func @transform_2(%arg0: i32) -> (i32, i32, i32, i32) {
    %c0_i32 = arith.constant 0 : i32
    %c0_i32_0 = arith.constant 0 : i32
    %c0_i32_1 = arith.constant 0 : i32
    %c0_i32_2 = arith.constant 0 : i32
    return %arg0, %c0_i32, %c0_i32_0, %c0_i32_1 : i32, i32, i32, i32
  }
  func.func @transform_3(%arg0: i32) -> (i32, i32, i32, i32) {
    %c0_i32 = arith.constant 0 : i32
    %c0_i32_0 = arith.constant 0 : i32
    %c0_i32_1 = arith.constant 0 : i32
    %c0_i32_2 = arith.constant 0 : i32
    return %arg0, %c0_i32, %c0_i32_0, %c0_i32_1 : i32, i32, i32, i32
  }
}

</mosaic_0001>

<bundles_post_ra>
// kernel: tpu_custom_call.1
= control target key start
LH: loop header
LB: loop body
LE: loop exit
PB: predicated region body
PF: predicated region fallthrough
CT: control target
= control target key end

     0   :  { %8 = vsyncpa [#allocation5], 0  ;;  %s1144_s0 = inlined_call_operand.hbm [shape: f32[11], index: 0, kind: input, shape index: {}]   ;;  %s1145_s1 = inlined_call_operand.hbm [shape: s32[2,1,8,8], index: 1, kind: input, shape index: {}]   ;;  %s1146_s2 = inlined_call_operand.hbm [shape: f32[2,1,8,32], index: 2, kind: input, shape index: {}]   ;;  %s1147_s3 = inlined_call_operand.hbm [shape: f32[2,1,8,32], index: 3, kind: output, shape index: {}]  }
   0x1   :  { %9 = vsyncpa [#allocation3], 0 }
   0x2   :  { %11 = vsyncpa [#allocation3 + $0x1], 0 }
   0x3   :  { %12 = vsyncpa [#allocation8], 0 }
   0x4   :  { %14 = vsyncpa [#allocation8 + $0x1], 0 }
   0x5   :  { %15 = vsyncpa [#allocation4], 0 }
   0x6   :  { %17 = vsyncpa [#allocation4 + $0x1], 0  ;;  %s876_s12 = smov 0   ;;  %s878_s13 = smov 0  }
   0x7   :  { %s880_s14 = smov 0   ;;  %s882_s15 = smov 0  }
   0x8 LB: > { %s897_s16 = sadd.s32 4294967295, %s848_s15   ;;  %s583_s17 = sadd.s32 4294967294, %s848_s15   ;;  %s848_s15 = sphi %s882_s15, %s1169_s15   ;;  %s844_s14 = sphi %s880_s14, %s1168_s14   ;;  %s840_s13 = sphi %s878_s13, %s1167_s13   ;;  %s836_s12 = sphi %s876_s12, %s1166_s12  }
   0x9   : > { %s901_s18 = sadd.s32 1, %s848_s15   ;;  %s51_s19 = sadd.s32 1, %s844_s14 }
   0xa   : > { %s48_s20 = ssub.s32 %s848_s15, %s901_s18  ;;  %p58_p0 = scmp.ne.s32.totalorder %s844_s14, %s840_s13 }
   0xb   : > { %p49_p1 = scmp.eq.s32.totalorder %s48_s20, 0  ;;  %p64_p2 = scmp.ne.s32.totalorder %s840_s13, %s836_s12 }
   0xc   : > { %p1148_p3 = scmp.eq.s32.totalorder %s897_s16, 0  ;;  %p114_p4 = scmp.eq.s32.totalorder %s897_s16, 1 }
   0xd   : > { %s913_s21 = scalar_select %p49_p1, %s844_s14, %s51_s19  }
   0xe   : > { %p917_p5 = por %p1148_p3, %p64_p2  ;;  %p924_p6 = por %p114_p4, %p58_p0 }
   0xf   : > { %p120_p7 = scmp.eq.s32.totalorder %s583_s17, 1  ;;  %p584_p8 = scmp.ge.s32.totalorder %s848_s15, 1 }
  0x10   : > { %s1152_s22 = scalar_select %p917_p5, 1, 0 }
  0x11   : > { %s1153_s23 = scalar_select %p924_p6, 1, 0 }
  0x12   : > { %p127_p9 = scmp.lt.s32.totalorder %s848_s15, 3  ;;  %p930_p10 = por %p120_p7, %p64_p2 }
  0x13   : > { %p59_p13 = scmp.eq.s32.totalorder %s848_s15, 0  ;;  %p661_p1 = scmp.lt.s32.totalorder %s848_s15, 2 }
  0x14   : > { %s1154_s24 = scalar_select %p930_p10, 1, 0 }
  0x15   : > { %p934_p11 = pnand %p584_p8, %p127_p9  ;;  %s944_s26 = sand.u32 1, %s844_s14  }
  0x16   : > { %p949_p3 = por %p59_p13, %p58_p0  ;;  %p1157_p2 = scmp.eq.s32.totalorder %s897_s16, 0 }
  0x17   : > { %s1155_s25 = scalar_select %p934_p11, 1, 0 }
  0x18   : > { %p645_p4 = pneg %p934_p11  ;;  %s587_s28 = sshll.u32 %s944_s26, 3 }
  0x19   : > { %s588_s29 = sshll.u32 %s848_s15, 7  ;;  %s701_s8 = scalar_lea.hbm %s1144_s0, 16 }
  0x1a   : > { %p646_p7 = pnand %p645_p4, %p1157_p2  ;;  %s962_s5 = scalar_lea.hbm %s1145_s1, %s588_s29 }
  0x1b   : > { %p702_p0 = scmp.ne.s32.totalorder %s1144_s0, %s701_s8  ;;  %p708_p4 = scmp.lt.u32.totalorder %s701_s8, %s1144_s0 }
  0x1c   : > { %p703_p8 = pneg %p646_p7 }
  0x1e   : > { %p704_p9 = pnand %p703_p8, %p702_p0 }
  0x20   : > { %p705_p13 = pneg %p704_p9 }
  0x22   : > { %p710_p2 = pnand %p708_p4, %p705_p13 }
  0x24   : > { %713 = shalt.err (!%p710_p2)
}
  0x25   : > { %s850_s19 = smov [#allocation2]   ;;  %s153_s4 = scalar_lea.vmem [#allocation6], %s587_s28 }
  0x26   : > { %648 = dma.hbm_to_smem (!%p646_p7), %s1144_s0, 16, %s850_s19, [#allocation5]  }
  0x27   : > { %s160_s6 = sshll.u32 %s153_s4, 4  ;;  %p982_p0 = pnand %p661_p1, %p949_p3  ;;  %s986_s6 = int_to_ptr.vmem [resolvable:$true] %s160_s6 }
  0x28   : > { %s150_s8 = scalar_lea.sflag [#allocation3], %s944_s26  ;;  %s714_s9 = scalar_lea.hbm %s962_s5, 128 }
  0x29   : > { %p715_p8 = scmp.ne.s32.totalorder %s962_s5, %s714_s9  ;;  %p716_p9 = pneg %p982_p0 }
  0x2a   : > { %s719_s11 = scalar_lea.hbm %s1145_s1, 256  ;;  %p720_p3 = scmp.lt.u32.totalorder %s962_s5, %s1145_s1 }
  0x2b   : > { %p717_p7 = pnand %p716_p9, %p715_p8  ;;  %p721_p1 = scmp.lt.u32.totalorder %s719_s11, %s714_s9 }
  0x2c   : > { %p723_p2 = scmp.lt.u32.totalorder %s714_s9, %s962_s5 }
  0x2d   : > { %p718_p13 = pneg %p717_p7  ;;  %p722_p4 = por %p721_p1, %p720_p3 }
  0x2f   : > { %p724_p12 = por %p723_p2, %p722_p4 }
  0x31   : > { %p725_p10 = pnand %p724_p12, %p718_p13 }
  0x33   : > { %728 = shalt.err (!%p725_p10)
}
  0x34   : > { %s729_s20 = scalar_lea.vmem %s986_s6, 128  ;;  %s851_s30 = smov [#allocation6]  }
  0x35   : > { %p730_p8 = scmp.ne.s32.totalorder %s986_s6, %s729_s20  ;;  %s734_s4 = sshll.u32 %s851_s30, 4  ;;  %s735_s4 = int_to_ptr.vmem [resolvable:$false] %s734_s4 }
  0x36   : > { %s736_s10 = scalar_lea.vmem %s735_s4, 256  ;;  %p737_p5 = scmp.lt.s32.totalorder %s986_s6, %s735_s4 }
  0x37   : > { %p732_p7 = pnand %p730_p8, %p716_p9  ;;  %p738_p3 = scmp.lt.s32.totalorder %s736_s10, %s729_s20 }
  0x39   : > { %p733_p6 = pneg %p732_p7  ;;  %p739_p1 = por %p738_p3, %p737_p5 }
  0x3b   : > { %p740_p4 = pnand %p739_p1, %p733_p6 }
  0x3d   : > { %743 = shalt.err (!%p740_p4)
}
  0x3e   : > { %652 = dma.hbm_to_vmem [thread:$0]  (!%p982_p0), %s962_s5, 128, %s986_s6, %s150_s8  }
  0x3f   : > { %s1019_s11 = scalar_lea.hbm %s1146_s2, %s588_s29  ;;  %s171_s17 = scalar_lea.vmem [#allocation7], %s587_s28 }
  0x40   : > { %s178_s19 = sshll.u32 %s171_s17, 4  ;;  %s168_s20 = scalar_lea.sflag [#allocation8], %s944_s26  ;;  %s179_s19 = int_to_ptr.vmem [resolvable:$true] %s178_s19 }
  0x41   : > { %s744_s30 = scalar_lea.hbm %s1019_s11, 128  ;;  %s749_s29 = scalar_lea.hbm %s1146_s2, 256 }
  0x42   : > { %p745_p5 = scmp.ne.s32.totalorder %s1019_s11, %s744_s30  ;;  %p750_p12 = scmp.lt.u32.totalorder %s1019_s11, %s1146_s2 }
  0x43   : > { %p751_p13 = scmp.lt.u32.totalorder %s749_s29, %s744_s30  ;;  %p753_p8 = scmp.lt.u32.totalorder %s744_s30, %s1019_s11 }
  0x44   : > { %p747_p6 = pnand %p745_p5, %p716_p9 }
  0x45   : > { %p752_p2 = por %p751_p13, %p750_p12 }
  0x46   : > { %p748_p10 = pneg %p747_p6 }
  0x47   : > { %p754_p7 = por %p753_p8, %p752_p2 }
  0x49   : > { %p755_p3 = pnand %p754_p7, %p748_p10 }
  0x4b   : > { %758 = shalt.err (!%p755_p3)
}
  0x4c   : > { %s759_s26 = scalar_lea.vmem %s179_s19, 128  ;;  %s852_s28 = smov [#allocation7]  }
  0x4d   : > { %p760_p1 = scmp.ne.s32.totalorder %s179_s19, %s759_s26  ;;  %s764_s10 = sshll.u32 %s852_s28, 4  ;;  %s765_s10 = int_to_ptr.vmem [resolvable:$false] %s764_s10 }
  0x4e   : > { %s766_s9 = scalar_lea.vmem %s765_s10, 256  ;;  %p767_p6 = scmp.lt.s32.totalorder %s179_s19, %s765_s10 }
  0x4f   : > { %p762_p4 = pnand %p760_p1, %p716_p9  ;;  %p768_p11 = scmp.lt.s32.totalorder %s766_s9, %s759_s26 }
  0x51   : > { %p763_p5 = pneg %p762_p4  ;;  %p769_p12 = por %p768_p11, %p767_p6 }
  0x53   : > { %p770_p13 = pnand %p769_p12, %p763_p5 }
  0x55   : > { %773 = shalt.err (!%p770_p13)
}
  0x56   : > { %655 = dma.hbm_to_vmem [thread:$0]  (!%p982_p0), %s1019_s11, 128, %s179_s19, %s168_s20  }
  0x57   : > { %p1159_p10 = scmp.ne.s32.totalorder %s1155_s25, 0 }
  0x58   : > { %p1160_p2 = scmp.eq.s32.totalorder (!%p1159_p10), %s897_s16, 0 }
  0x59   : > { %187 = sbr.rel (%p1159_p10) target bundleno = 739 (0x2e3), region = 32 }
  0x60   : > { %819 = dma.done.wait (%p1160_p2), [#allocation5], 16   ;;  %p1161_p9 = pmov %p1160_p2 }
  0x61   : > { %s1050_s27 = sand.u32 1, %s840_s13   ;;  %p1162_p11 = scmp.ne.s32.totalorder %s1152_s22, 0 }
  0x62   : > { %821 = vsyncadd (%p1161_p9), [#allocation5], 4294967280  ;;  %s1053_s17 = sshll.u32 %s1050_s27, 3  ;;  %s194_s7 = scalar_lea.sflag [#allocation3], %s1050_s27 }
  0x63   : > { %s197_s11 = scalar_lea.vmem [#allocation6], %s1053_s17 }
  0x64   : > { %823 = dma.done.wait (%p1162_p11), %s194_s7, 128  }
  0x65   : > { %825 = vsyncadd (%p1162_p11), %s194_s7, 4294967168  ;;  %s203_s25 = scalar_lea.sflag [#allocation8], %s1050_s27  ;;  %s206_s19 = scalar_lea.vmem [#allocation7], %s1053_s17 }
  0x66   : > { %827 = dma.done.wait (%p1162_p11), %s203_s25, 128  }
  0x67   : > { %829 = vsyncadd (%p1162_p11), %s203_s25, 4294967168 }
  0x68   : > { %211 = sfence }
  0x69   : > { %v235_v0 = vld [vmem:[%s197_s11] sm:$0xff]  ;;  %s239_s20 = sld [smem:[#allocation2]]  ;;  %s598_s30 = sld [smem:[#allocation2 + $0x1]]  ;;  %v853_v1 = vmov 0.0   ;;  %vm305_vm10 = vcmask 64512   ;;  %v318_v42 = vld [vmem:[%s206_s19] sm:$0xff] }
  0x6a   : > { %vm236_vm0 = vcmp.eq.s32.totalorder %v235_v0, 0  ;;  %vm242_vm1 = vcmp.eq.s32.totalorder %v235_v0, 1  ;;  %s600_s5 = sld [smem:[#allocation2 + $0x2]]  ;;  %625 = vmatprep.subr.mxu0 %v853_v1  ;;  %630 = vmatprep.subr.mxu1 %v853_v1  ;;  %vm249_vm2 = vcmp.eq.s32.totalorder %v235_v0, 2  ;;  %s602_s6 = sld [smem:[#allocation2 + $0x3]]  ;;  %vm256_vm3 = vcmp.eq.s32.totalorder %v235_v0, 3 }
  0x6b   : > { %s604_s29 = sld [smem:[#allocation2 + $0x4]]  ;;  %s1069_s8 = sld [smem:[#allocation2 + $0x5]]  ;;  %v596_v2 = vsel %vm236_vm0, 1.0, %v853_v1  ;;  %v597_v3 = vsel %vm242_vm1, 1.0, %v853_v1  ;;  %v599_v4 = vsel %vm249_vm2, 1.0, %v853_v1  ;;  %vm263_vm4 = vcmp.eq.s32.totalorder %v235_v0, 4  ;;  %626 = vmatpush3.msra.mxu0 %v318_v42 }
  0x6c   : > { %s1073_s22 = sld [smem:[#allocation2 + $0x6]]  ;;  %v601_v7 = vsel %vm256_vm3, 1.0, %v853_v1  ;;  %s1077_s4 = sld [smem:[#allocation2 + $0x7]]  ;;  %vm270_vm5 = vcmp.eq.s32.totalorder %v235_v0, 5  ;;  %v603_v13 = vsel %vm263_vm4, 1.0, %v853_v1  ;;  %vm277_vm6 = vcmp.eq.s32.totalorder %v235_v0, 6 }
  0x6d   : > { %s612_s26 = sld [smem:[#allocation2 + $0x8]]  ;;  %v605_v17 = vsel %vm270_vm5, 1.0, %v853_v1  ;;  %s614_s28 = sld [smem:[#allocation2 + $0x9]]  ;;  %vm284_vm7 = vcmp.eq.s32.totalorder %v235_v0, 7  ;;  %v607_v21 = vsel %vm277_vm6, 1.0, %v853_v1  ;;  %vm291_vm8 = vcmp.eq.s32.totalorder %v235_v0, 8 }
  0x6e   : > { %v609_v25 = vsel %vm284_vm7, 1.0, %v853_v1  ;;  %vm298_vm9 = vcmp.eq.s32.totalorder %v235_v0, 9  ;;  %v611_v29 = vsel %vm291_vm8, 1.0, %v853_v1  ;;  %vm854_vm11 = vmmov 0   ;;  %s618_s10 = sshll.u32 %s897_s16, 7  ;;  %s234_s9 = scalar_lea.vmem [#allocation9], %s1053_s17 }
  0x6f   : > { %v240_v5 = vstv %s239_s20  ;;  %v246_v6 = vstv %s598_s30  ;;  %v613_v33 = vsel %vm298_vm9, 1.0, %v853_v1  ;;  %627 = vmatprep.mubr.msk.f32.mxu0 %vm854_vm11, %v853_v1  ;;  %632 = vmatprep.mubr.msk.f32.mxu1 %vm854_vm11, %v853_v1  ;;  %s478_s7 = sshll.u32 %s234_s9, 4  ;;  %vm462_vm12 = vcmask 261120   ;;  %s1100_s19 = scalar_lea.hbm %s1147_s3, %s618_s10  ;;  %s1102_s7 = int_to_ptr.vmem [resolvable:$true] %s478_s7 }
  0x70   : > { %v241_v8 = vmul.f32 %v596_v2, %v240_v5  ;;  %v247_v9 = vmul.f32 %v597_v3, %v246_v6  ;;  %v253_v10 = vstv %s600_s5  ;;  %v260_v12 = vstv %s602_s6  ;;  %s465_s20 = scalar_lea.sflag [#allocation4], %s1050_s27  ;;  %s774_s30 = scalar_lea.vmem %s1102_s7, 128 }
  0x71   : > { %v254_v11 = vmul.f32 %v599_v4, %v253_v10  ;;  %v261_v15 = vmul.f32 %v601_v7, %v260_v12  ;;  %v267_v16 = vstv %s604_s29  ;;  %v274_v18 = vstv %s1069_s8  ;;  %p775_p0 = scmp.ne.s32.totalorder %s1102_s7, %s774_s30  ;;  %p1163_p8 = scmp.ne.s32.totalorder %s1153_s23, 0 }
  0x72   : > { %v248_v14 = vadd.f32 %v247_v9, %v241_v8  ;;  %v268_v20 = vmul.f32 %v603_v13, %v267_v16  ;;  %v281_v22 = vstv %s1073_s22  ;;  %v275_v24 = vmul.f32 %v605_v17, %v274_v18  ;;  %s855_s16 = smov [#allocation9]  }
  0x73   : > { %v288_v26 = vstv %s1077_s4  ;;  %v282_v28 = vmul.f32 %v607_v21, %v281_v22  ;;  %v295_v30 = vstv %s612_s26  ;;  %v302_v34 = vstv %s614_s28  ;;  %p776_p7 = pnand %p775_p0, %p1163_p8  ;;  %s778_s17 = sshll.u32 %s855_s16, 4  ;;  %s779_s17 = int_to_ptr.vmem [resolvable:$false] %s778_s17 }
  0x74   : > { %v255_v19 = vadd.f32 %v254_v11, %v248_v14  ;;  %v289_v32 = vmul.f32 %v609_v25, %v288_v26  ;;  %v296_v36 = vmul.f32 %v611_v29, %v295_v30  ;;  %v303_v38 = vmul.f32 %v613_v33, %v302_v34  ;;  %s780_s5 = scalar_lea.vmem %s779_s17, 256  ;;  %p781_p1 = scmp.lt.s32.totalorder %s1102_s7, %s779_s17 }
  0x75   : > { %p777_p3 = pneg %p776_p7  ;;  %p782_p4 = scmp.lt.s32.totalorder %s780_s5, %s774_s30 }
  0x76   : > { %v262_v23 = vadd.f32 %v261_v15, %v255_v19 }
  0x77   : > { %p783_p5 = por %p782_p4, %p781_p1 }
  0x78   : > { %v269_v27 = vadd.f32 %v268_v20, %v262_v23 }
  0x79   : > { %p784_p6 = pnand %p783_p5, %p777_p3 }
  0x7a   : > { %v276_v31 = vadd.f32 %v275_v24, %v269_v27 }
  0x7c   : > { %v283_v35 = vadd.f32 %v282_v28, %v276_v31 }
  0x7e   : > { %v290_v37 = vadd.f32 %v289_v32, %v283_v35 }
  0x80   : > { %v297_v39 = vadd.f32 %v296_v36, %v290_v37 }
  0x82   : > { %v304_v40 = vadd.f32 %v303_v38, %v297_v39 }
  0x84   : > { %v306_v41 = vsel %vm305_vm10, %v304_v40, 0.0 }
  0x85   : > { %307 = vadd.xlane.f32.xlu0 %v306_v41 }
 0x112   : > { %v308_v43 = vpop.xlane.xlu0 %307 }
 0x113   : > { %v309_v44 = vrot.slane %v308_v43, 4 }
 0x115   : > { %v310_v45 = vadd.f32 %v309_v44, %v308_v43 }
 0x117   : > { %v311_v46 = vrot.slane %v310_v45, 2 }
 0x119   : > { %v312_v47 = vadd.f32 %v311_v46, %v310_v45 }
 0x11b   : > { %v313_v48 = vrot.slane %v312_v47, 1 }
 0x11d   : > { %v314_v49 = vadd.f32 %v313_v48, %v312_v47 }
 0x11f   : > { %699 = vrcp.f32 %v314_v49 }
 0x129   : > { %v700_v50 = vpop.eup %699 }
 0x12a   : > { %v317_v51 = vmul.f32 %v700_v50, %v304_v40 }
 0x12c   : > { %628 = vmatmul.mubr.msk.f32.vlgmr.msra.gmra.mrb[0].mxu0 %vm305_vm10, %v317_v51 }
 0x1ff   : > { %v388_v52 = vpop.f32.mrb[0].mxu0 }
 0x200   : > { %v629_v53 = vpop.f32.mrb[1].mxu0  ;;  %631 = vmatpush3.msra.mxu1 %v388_v52 }
 0x201   : > { %633 = vmatmul.mubr.msk.f32.vlgmr.msra.gmra.mrb[0].mxu1 %vm305_vm10, %v317_v51 }
 0x2d4   : > { %v458_v54 = vpop.f32.mrb[0].mxu1 }
 0x2d5   : > { %463 = vst.msk [vmem:[%s234_s9] sm:$0xff] %vm462_vm12, %v458_v54  ;;  %v634_v55 = vpop.f32.mrb[1].mxu1 }
 0x2d6   : > { %787 = shalt.err (!%p784_p6)
}
 0x2d7   : > { %s788_s27 = scalar_lea.hbm %s1100_s19, 128  ;;  %s792_s8 = scalar_lea.hbm %s1147_s3, 256 }
 0x2d8   : > { %p789_p12 = scmp.ne.s32.totalorder %s1100_s19, %s788_s27  ;;  %p793_p2 = scmp.lt.u32.totalorder %s1100_s19, %s1147_s3 }
 0x2d9   : > { %p794_p9 = scmp.lt.u32.totalorder %s792_s8, %s788_s27  ;;  %p796_p0 = scmp.lt.u32.totalorder %s788_s27, %s1100_s19 }
 0x2da   : > { %p790_p13 = pnand %p789_p12, %p1163_p8 }
 0x2db   : > { %p795_p11 = por %p794_p9, %p793_p2 }
 0x2dc   : > { %p791_p10 = pneg %p790_p13 }
 0x2dd   : > { %p797_p7 = por %p796_p0, %p795_p11 }
 0x2df   : > { %p798_p3 = pnand %p797_p7, %p791_p10 }
 0x2e1   : > { %801 = shalt.err (!%p798_p3)
}
 0x2e2   : > { %643 = dma.vmem_to_hbm [thread:$0]  (%p1163_p8), %s1102_s7, 128, %s1100_s19, %s465_s20  }
 0x2e3 PF: > { %s490_s26 = sand.u32 1, %s836_s12   ;;  %p1164_p1 = scmp.ne.s32.totalorder %s1154_s24, 0 }
 0x2e4   : > { %p1165_p4 = scmp.ge.s32.totalorder %s848_s15, 2  ;;  %s491_s28 = scalar_lea.sflag [#allocation4], %s490_s26 }
 0x2e6   : > { %p657_p5 = pnand %p1165_p4, %p1164_p1 }
 0x2e8   : > { %831 = dma.done.wait (!%p657_p5), %s491_s28, 128  }
 0x2e9   : > { %833 = vsyncadd (!%p657_p5), %s491_s28, 4294967168  ;;  %p20_p6 = scmp.ge.s32.totalorder %s901_s18, 4   ;;  %s1166_s12 = smov %s840_s13 }
 0x2ea   : > { %s1167_s13 = smov %s844_s14  ;;  %s1168_s14 = smov %s913_s21 }
 0x2eb   : > { %s1169_s15 = smov %s901_s18  ;;  %22 = sbr.rel (!%p20_p6) target bundleno = 8 (0x8), region = 95 }
 0x2f2   :  { %496 = vsyncpa [#allocation3], 1 }
 0x2f3   :  { %498 = vsyncpa [#allocation3 + $0x1], 1 }
 0x2f4   :  { %499 = vsyncpa [#allocation8], 1 }
 0x2f5   :  { %501 = vsyncpa [#allocation8 + $0x1], 1 }
 0x2f6   :  { %502 = vsyncpa [#allocation4], 1 }
 0x2f7   :  { %504 = vsyncpa [#allocation4 + $0x1], 1 }
 0x2f8   :  { %505 = vsyncpa [#allocation5], 1 }
 0x2f9   :  { %507 = vsyncpa [#allocation5 + $0x1], 1 }

</bundles_post_ra>
